<compile_context>
chip_gen: v7x
topology: tpu7x:2x2x1
jax: 0.10.0
libtpu: 0.0.40
codegen_flags: <defaults>
</compile_context>

<pallas_src>
import jax
import jax.numpy as jnp
from jax.experimental import pallas as pl
from jax.experimental.pallas import tpu as pltpu

LANE = 128
SUBLANE = 8


def _round_up(n, m):
    return ((n + m - 1) // m) * m


def dqn_kernel(x_ref, w1_ref, b1_ref, w2_ref, b2_ref, w3_ref, b3_ref, o_ref):
    # One batch tile per grid step. Weights/biases are VMEM-resident across the
    # whole grid (constant index maps). Matmuls run on the MXU with bf16 inputs
    # and f32 accumulation; bias-add / ReLU are f32 VPU work that hides under
    # the matmuls.
    x = x_ref[...].astype(jnp.bfloat16)

    h1 = jnp.dot(x, w1_ref[...], preferred_element_type=jnp.float32) + b1_ref[...]
    h1 = jnp.maximum(h1, 0.0)

    h2 = jnp.dot(h1.astype(jnp.bfloat16), w2_ref[...],
                 preferred_element_type=jnp.float32) + b2_ref[...]
    h2 = jnp.maximum(h2, 0.0)

    out = jnp.dot(h2.astype(jnp.bfloat16), w3_ref[...],
                  preferred_element_type=jnp.float32) + b3_ref[...]
    o_ref[...] = out.astype(o_ref.dtype)


def dqn_forward(x, params, *, batch_tile=512):
    """x: [B, state_dim] float32. params: dict of w1,b1,w2,b2,w3,b3 (f32)."""
    w1, b1, w2, b2, w3, b3 = (params[k] for k in ("w1", "b1", "w2", "b2", "w3", "b3"))
    B, state_dim = x.shape
    hidden = w1.shape[1]
    action_dim = w3.shape[1]

    # Lane-dense output: pad the last layer's output dim up to a multiple of 128
    # with zero columns so the final store is an unmasked full-lane vst.
    n_pad = _round_up(action_dim, LANE)
    w3p = jnp.zeros((hidden, n_pad), w3.dtype).at[:, :action_dim].set(w3)
    b3p = jnp.zeros((1, n_pad), b3.dtype).at[:, :action_dim].set(b3)

    # Batch tiling: largest tile up to `batch_tile`, multiple of 8 (f32 sublane);
    # pad B so the grid divides evenly, slice back at the end.
    tb = min(batch_tile, _round_up(B, SUBLANE))
    bp = _round_up(B, tb)
    xp = x if bp == B else jnp.zeros((bp, state_dim), x.dtype).at[:B].set(x)

    # bf16 weights for the MXU fast path; biases stay f32.
    w1b = w1.astype(jnp.bfloat16)
    w2b = w2.astype(jnp.bfloat16)
    w3b = w3p.astype(jnp.bfloat16)

    grid = (bp // tb,)

    out = pl.pallas_call(
        dqn_kernel,
        out_shape=jax.ShapeDtypeStruct((bp, n_pad), jnp.float32),
        grid=grid,
        in_specs=[
            # x: one batch tile per grid step.
            pl.BlockSpec((tb, state_dim), lambda i: (i, 0)),
            # Weights / biases: constant index maps -> stay resident in VMEM.
            pl.BlockSpec(w1b.shape, lambda i: (0, 0)),
            pl.BlockSpec(b1.shape, lambda i: (0, 0)),
            pl.BlockSpec(w2b.shape, lambda i: (0, 0)),
            pl.BlockSpec(b2.shape, lambda i: (0, 0)),
            pl.BlockSpec(w3b.shape, lambda i: (0, 0)),
            pl.BlockSpec(b3p.shape, lambda i: (0, 0)),
        ],
        out_specs=pl.BlockSpec((tb, n_pad), lambda i: (i, 0)),
        compiler_params=pltpu.CompilerParams(
            dimension_semantics=("parallel",)),
    )(xp, w1b, b1, w2b, b2, w3b, b3p)

    return out[:B, :action_dim]


def init_params(key, state_dim, action_dim, hidden=64):
    # Deterministic synthetic init (mimics PyTorch Linear's U(-1/sqrt(fan_in), 1/sqrt(fan_in))).
    def linear_init(k, fan_in, fan_out):
        kw, kb = jax.random.split(k)
        bound = 1.0 / jnp.sqrt(jnp.float32(fan_in))
        w = jax.random.uniform(kw, (fan_in, fan_out), jnp.float32, -bound, bound)
        b = jax.random.uniform(kb, (1, fan_out), jnp.float32, -bound, bound)
        return w, b

    k1, k2, k3 = jax.random.split(key, 3)
    w1, b1 = linear_init(k1, state_dim, hidden)
    w2, b2 = linear_init(k2, hidden, hidden)
    w3, b3 = linear_init(k3, hidden, action_dim)
    return {"w1": w1, "b1": b1, "w2": w2, "b2": b2, "w3": w3, "b3": b3}


def dqn_reference_mixed(x, p):
    # Matches the kernel's numerics: bf16 matmul inputs, f32 accumulation/elementwise.
    def mm(a, w):
        return jnp.dot(a.astype(jnp.bfloat16), w.astype(jnp.bfloat16),
                       preferred_element_type=jnp.float32)
    h1 = jnp.maximum(mm(x, p["w1"]) + p["b1"], 0.0)
    h2 = jnp.maximum(mm(h1, p["w2"]) + p["b2"], 0.0)
    return mm(h2, p["w3"]) + p["b3"]


def dqn_reference_f32(x, p):
    h1 = jnp.maximum(x @ p["w1"] + p["b1"], 0.0)
    h2 = jnp.maximum(h1 @ p["w2"] + p["b2"], 0.0)
    return h2 @ p["w3"] + p["b3"]


if __name__ == "__main__":
    key = jax.random.PRNGKey(0)
    k_params, k_x1, k_x2 = jax.random.split(key, 3)

    state_dim, action_dim = 16, 4
    params = init_params(k_params, state_dim, action_dim)

    # Small case (single grid step).
    batch = 8
    x = jax.random.normal(k_x1, (batch, state_dim), jnp.float32)
    out = jax.block_until_ready(dqn_forward(x, params))
    assert out.shape == (batch, action_dim)
    assert jnp.allclose(out, dqn_reference_mixed(x, params), atol=1e-3, rtol=1e-3)
    assert jnp.allclose(out, dqn_reference_f32(x, params), atol=5e-2, rtol=5e-2)

    # Larger, non-multiple batch: exercises batch padding + multi-step grid.
    batch2 = 1000
    x2 = jax.random.normal(k_x2, (batch2, state_dim), jnp.float32)
    out2 = jax.block_until_ready(dqn_forward(x2, params))
    assert out2.shape == (batch2, action_dim)
    assert jnp.allclose(out2, dqn_reference_mixed(x2, params), atol=1e-3, rtol=1e-3)

    print("KERNEL_OK")
</pallas_src>

<mosaic_0001>
module attributes {stable_mosaic.version = 11 : i64} {
  func.func @dqn_kernel(%arg0: i32, %arg1: memref<8x16xf32, #tpu.memory_space<vmem>>, %arg2: memref<16x64xbf16, #tpu.memory_space<vmem>>, %arg3: memref<1x64xf32, #tpu.memory_space<vmem>>, %arg4: memref<64x64xbf16, #tpu.memory_space<vmem>>, %arg5: memref<1x64xf32, #tpu.memory_space<vmem>>, %arg6: memref<64x128xbf16, #tpu.memory_space<vmem>>, %arg7: memref<1x128xf32, #tpu.memory_space<vmem>>, %arg8: memref<8x128xf32, #tpu.memory_space<vmem>>) attributes {dimension_semantics = [#tpu.dimension_semantics<parallel>], iteration_bounds = array<i64: 1>, scalar_prefetch = 0 : i64, scratch_operands = 0 : i64, tpu.core_type = #tpu.core_type<tc>, window_params = [{transform_indices = @transform_0, window_bounds = array<i64: 8, 16>}, {pipeline_mode = #tpu.pipeline_mode<synchronous>, transform_indices = @transform_1, window_bounds = array<i64: 16, 64>}, {pipeline_mode = #tpu.pipeline_mode<synchronous>, transform_indices = @transform_2, window_bounds = array<i64: 1, 64>}, {pipeline_mode = #tpu.pipeline_mode<synchronous>, transform_indices = @transform_3, window_bounds = array<i64: 64, 64>}, {pipeline_mode = #tpu.pipeline_mode<synchronous>, transform_indices = @transform_4, window_bounds = array<i64: 1, 64>}, {pipeline_mode = #tpu.pipeline_mode<synchronous>, transform_indices = @transform_5, window_bounds = array<i64: 64, 128>}, {pipeline_mode = #tpu.pipeline_mode<synchronous>, transform_indices = @transform_6, window_bounds = array<i64: 1, 128>}, {transform_indices = @transform_7, window_bounds = array<i64: 8, 128>}]} {
    %c0 = arith.constant 0 : index
    %c0_0 = arith.constant 0 : index
    %0 = vector.load %arg1[%c0, %c0_0] : memref<8x16xf32, #tpu.memory_space<vmem>>, vector<8x16xf32>
    %1 = arith.truncf %0 : vector<8x16xf32> to vector<8x16xbf16>
    %c0_1 = arith.constant 0 : index
    %c0_2 = arith.constant 0 : index
    %2 = vector.load %arg2[%c0_1, %c0_2] : memref<16x64xbf16, #tpu.memory_space<vmem>>, vector<16x64xbf16>
    %cst = arith.constant dense<0.000000e+00> : vector<8x64xf32>
    %3 = tpu.matmul %1, %2, %cst {dimension_numbers = #tpu.dot_dimension_numbers<[1], [0], [0], [1], [0, 0, 1, 1], [], []>} : vector<8x16xbf16>, vector<16x64xbf16>, vector<8x64xf32> -> vector<8x64xf32>
    %c0_3 = arith.constant 0 : index
    %c0_4 = arith.constant 0 : index
    %4 = vector.load %arg3[%c0_3, %c0_4] : memref<1x64xf32, #tpu.memory_space<vmem>>, vector<1x64xf32>
    %5 = vector.broadcast %4 : vector<1x64xf32> to vector<8x64xf32>
    %6 = arith.addf %3, %5 : vector<8x64xf32>
    %cst_5 = arith.constant 0.000000e+00 : f32
    %7 = vector.broadcast %cst_5 : f32 to vector<8x64xf32>
    %8 = arith.maximumf %6, %7 : vector<8x64xf32>
    %9 = arith.truncf %8 : vector<8x64xf32> to vector<8x64xbf16>
    %c0_6 = arith.constant 0 : index
    %c0_7 = arith.constant 0 : index
    %10 = vector.load %arg4[%c0_6, %c0_7] : memref<64x64xbf16, #tpu.memory_space<vmem>>, vector<64x64xbf16>
    %cst_8 = arith.constant dense<0.000000e+00> : vector<8x64xf32>
    %11 = tpu.matmul %9, %10, %cst_8 {dimension_numbers = #tpu.dot_dimension_numbers<[1], [0], [0], [1], [0, 0, 1, 1], [], []>} : vector<8x64xbf16>, vector<64x64xbf16>, vector<8x64xf32> -> vector<8x64xf32>
    %c0_9 = arith.constant 0 : index
    %c0_10 = arith.constant 0 : index
    %12 = vector.load %arg5[%c0_9, %c0_10] : memref<1x64xf32, #tpu.memory_space<vmem>>, vector<1x64xf32>
    %13 = vector.broadcast %12 : vector<1x64xf32> to vector<8x64xf32>
    %14 = arith.addf %11, %13 : vector<8x64xf32>
    %cst_11 = arith.constant 0.000000e+00 : f32
    %15 = vector.broadcast %cst_11 : f32 to vector<8x64xf32>
    %16 = arith.maximumf %14, %15 : vector<8x64xf32>
    %17 = arith.truncf %16 : vector<8x64xf32> to vector<8x64xbf16>
    %c0_12 = arith.constant 0 : index
    %c0_13 = arith.constant 0 : index
    %18 = vector.load %arg6[%c0_12, %c0_13] : memref<64x128xbf16, #tpu.memory_space<vmem>>, vector<64x128xbf16>
    %cst_14 = arith.constant dense<0.000000e+00> : vector<8x128xf32>
    %19 = tpu.matmul %17, %18, %cst_14 {dimension_numbers = #tpu.dot_dimension_numbers<[1], [0], [0], [1], [0, 0, 1, 1], [], []>} : vector<8x64xbf16>, vector<64x128xbf16>, vector<8x128xf32> -> vector<8x128xf32>
    %c0_15 = arith.constant 0 : index
    %c0_16 = arith.constant 0 : index
    %20 = vector.load %arg7[%c0_15, %c0_16] : memref<1x128xf32, #tpu.memory_space<vmem>>, vector<1x128xf32>
    %21 = vector.broadcast %20 : vector<1x128xf32> to vector<8x128xf32>
    %22 = arith.addf %19, %21 : vector<8x128xf32>
    %c0_17 = arith.constant 0 : index
    %c0_18 = arith.constant 0 : index
    %23 = vector.load %arg8[%c0_17, %c0_18] : memref<8x128xf32, #tpu.memory_space<vmem>>, vector<8x128xf32>
    tpu.vector_store %arg8[%c0_17, %c0_18], %22 {strides = array<i32>} : memref<8x128xf32, #tpu.memory_space<vmem>>, vector<8x128xf32>,
    return
  }
  func.func @transform_0(%arg0: i32) -> (i32, i32) {
    %c0_i32 = arith.constant 0 : i32
    %c0_i32_0 = arith.constant 0 : i32
    return %arg0, %c0_i32 : i32, i32
  }
  func.func @transform_1(%arg0: i32) -> (i32, i32) {
    %c0_i32 = arith.constant 0 : i32
    %c0_i32_0 = arith.constant 0 : i32
    %c0_i32_1 = arith.constant 0 : i32
    return %c0_i32, %c0_i32_0 : i32, i32
  }
  func.func @transform_2(%arg0: i32) -> (i32, i32) {
    %c0_i32 = arith.constant 0 : i32
    %c0_i32_0 = arith.constant 0 : i32
    %c0_i32_1 = arith.constant 0 : i32
    return %c0_i32, %c0_i32_0 : i32, i32
  }
  func.func @transform_3(%arg0: i32) -> (i32, i32) {
    %c0_i32 = arith.constant 0 : i32
    %c0_i32_0 = arith.constant 0 : i32
    %c0_i32_1 = arith.constant 0 : i32
    return %c0_i32, %c0_i32_0 : i32, i32
  }
  func.func @transform_4(%arg0: i32) -> (i32, i32) {
    %c0_i32 = arith.constant 0 : i32
    %c0_i32_0 = arith.constant 0 : i32
    %c0_i32_1 = arith.constant 0 : i32
    return %c0_i32, %c0_i32_0 : i32, i32
  }
  func.func @transform_5(%arg0: i32) -> (i32, i32) {
    %c0_i32 = arith.constant 0 : i32
    %c0_i32_0 = arith.constant 0 : i32
    %c0_i32_1 = arith.constant 0 : i32
    return %c0_i32, %c0_i32_0 : i32, i32
  }
  func.func @transform_6(%arg0: i32) -> (i32, i32) {
    %c0_i32 = arith.constant 0 : i32
    %c0_i32_0 = arith.constant 0 : i32
    %c0_i32_1 = arith.constant 0 : i32
    return %c0_i32, %c0_i32_0 : i32, i32
  }
  func.func @transform_7(%arg0: i32) -> (i32, i32) {
    %c0_i32 = arith.constant 0 : i32
    %c0_i32_0 = arith.constant 0 : i32
    return %arg0, %c0_i32 : i32, i32
  }
}

</mosaic_0001>

<bundles_post_ra>
// kernel: tpu_custom_call.1
= control target key start
LH: loop header
LB: loop body
LE: loop exit
PB: predicated region body
PF: predicated region fallthrough
CT: control target
= control target key end

     0   :  { %12 = vsyncpa [#allocation3], 0  ;;  %s651_s0 = inlined_call_operand.hbm [shape: f32[8,16], index: 0, kind: input, shape index: {}]   ;;  %s652_s1 = inlined_call_operand.hbm [shape: bf16[16,64], index: 1, kind: input, shape index: {}]   ;;  %s653_s2 = inlined_call_operand.vmem [shape: f32[1,64], index: 2, kind: input, shape index: {}]   ;;  %s654_s3 = inlined_call_operand.hbm [shape: bf16[64,64], index: 3, kind: input, shape index: {}]   ;;  %s655_s4 = inlined_call_operand.vmem [shape: f32[1,64], index: 4, kind: input, shape index: {}]   ;;  %s656_s5 = inlined_call_operand.hbm [shape: bf16[64,128], index: 5, kind: input, shape index: {}]   ;;  %s657_s6 = inlined_call_operand.vmem [shape: f32[1,128], index: 6, kind: input, shape index: {}]   ;;  %s658_s7 = inlined_call_operand.hbm [shape: f32[8,128], index: 7, kind: output, shape index: {}]  }
   0x1   :  { %13 = vsyncpa [#allocation6], 0 }
   0x2   :  { %14 = vsyncpa [#allocation9], 0 }
   0x3   :  { %15 = vsyncpa [#allocation4], 0  ;;  %s522_s24 = smov [#allocation5]   ;;  %s404_s28 = scalar_lea.hbm %s652_s1, 128 }
   0x4   :  { %s31_s25 = sshll.u32 %s522_s24, 4  ;;  %p405_p0 = scmp.ne.s32.totalorder %s652_s1, %s404_s28  ;;  %s32_s25 = int_to_ptr.vmem [resolvable:$true] %s31_s25 }
   0x5   :  { %p408_p1 = scmp.lt.u32.totalorder %s404_s28, %s652_s1 }
   0x7   :  { %p410_p2 = pnand %p408_p1, %p405_p0 }
   0x9   :  { %413 = shalt.err (!%p410_p2)
}
   0xa   :  { %s414_s10 = scalar_lea.vmem %s32_s25, 128  ;;  %p419_p4 = scmp.lt.s32.totalorder %s32_s25, %s32_s25 }
   0xb   :  { %p415_p3 = scmp.ne.s32.totalorder %s32_s25, %s414_s10  ;;  %p420_p5 = scmp.lt.s32.totalorder %s414_s10, %s414_s10 }
   0xd   :  { %p421_p6 = por %p420_p5, %p419_p4 }
   0xf   :  { %p422_p7 = pnand %p421_p6, %p415_p3 }
  0x11   :  { %425 = shalt.err (!%p422_p7)
}
  0x12   :  { %s523_s11 = smov 64   ;;  %s524_s12 = smov 4  }
  0x13   :  { %37 = dma.hbm_to_vmem [thread:$0]  %s652_s1, 128, %s32_s25, [#allocation6], %s523_s11, %s523_s11, %s524_s12  }
  0x14   :  { %s525_s15 = smov [#allocation2]   ;;  %s526_s17 = smov [#allocation7]  }
  0x15   :  { %s22_s16 = sshll.u32 %s525_s15, 4  ;;  %s45_s18 = sshll.u32 %s526_s17, 4  ;;  %s23_s16 = int_to_ptr.vmem [resolvable:$true] %s22_s16  ;;  %s46_s18 = int_to_ptr.vmem [resolvable:$true] %s45_s18 }
  0x16   :  { %s426_s21 = scalar_lea.hbm %s651_s0, 128 }
  0x17   :  { %p427_p8 = scmp.ne.s32.totalorder %s651_s0, %s426_s21  ;;  %p430_p9 = scmp.lt.u32.totalorder %s426_s21, %s651_s0 }
  0x19   :  { %p432_p10 = pnand %p430_p9, %p427_p8 }
  0x1b   :  { %435 = shalt.err (!%p432_p10)
}
  0x1c   :  { %s436_s1 = scalar_lea.vmem %s23_s16, 128  ;;  %p441_p12 = scmp.lt.s32.totalorder %s23_s16, %s23_s16 }
  0x1d   :  { %p437_p11 = scmp.ne.s32.totalorder %s23_s16, %s436_s1  ;;  %p442_p13 = scmp.lt.s32.totalorder %s436_s1, %s436_s1 }
  0x1f   :  { %p443_p0 = por %p442_p13, %p441_p12 }
  0x21   :  { %p444_p1 = pnand %p443_p0, %p437_p11 }
  0x23   :  { %447 = shalt.err (!%p444_p1)
}
  0x24   :  { %25 = dma.hbm_to_vmem [thread:$0]  %s651_s0, 128, %s23_s16, [#allocation3]  }
  0x25   :  { %s448_s30 = scalar_lea.hbm %s654_s3, 512 }
  0x26   :  { %p449_p2 = scmp.ne.s32.totalorder %s654_s3, %s448_s30  ;;  %p452_p3 = scmp.lt.u32.totalorder %s448_s30, %s654_s3 }
  0x28   :  { %p454_p4 = pnand %p452_p3, %p449_p2 }
  0x2a   :  { %457 = shalt.err (!%p454_p4)
}
  0x2b   :  { %s458_s14 = scalar_lea.vmem %s46_s18, 512  ;;  %p463_p6 = scmp.lt.s32.totalorder %s46_s18, %s46_s18 }
  0x2c   :  { %p459_p5 = scmp.ne.s32.totalorder %s46_s18, %s458_s14  ;;  %p464_p7 = scmp.lt.s32.totalorder %s458_s14, %s458_s14 }
  0x2e   :  { %p465_p8 = por %p464_p7, %p463_p6 }
  0x30   :  { %p466_p9 = pnand %p465_p8, %p459_p5 }
  0x32   :  { %469 = shalt.err (!%p466_p9)
}
  0x33   :  { %51 = dma.hbm_to_vmem [thread:$0]  %s654_s3, 512, %s46_s18, [#allocation6], %s523_s11, %s523_s11, %s524_s12  }
  0x34   :  { %s527_s16 = smov [#allocation8]   ;;  %s470_s21 = scalar_lea.hbm %s656_s5, 512 }
  0x35   :  { %s59_s17 = sshll.u32 %s527_s16, 4  ;;  %p471_p10 = scmp.ne.s32.totalorder %s656_s5, %s470_s21  ;;  %s60_s17 = int_to_ptr.vmem [resolvable:$true] %s59_s17 }
  0x36   :  { %p474_p11 = scmp.lt.u32.totalorder %s470_s21, %s656_s5 }
  0x38   :  { %p476_p12 = pnand %p474_p11, %p471_p10 }
  0x3a   :  { %479 = shalt.err (!%p476_p12)
}
  0x3b   :  { %s480_s1 = scalar_lea.vmem %s60_s17, 512  ;;  %p485_p0 = scmp.lt.s32.totalorder %s60_s17, %s60_s17 }
  0x3c   :  { %p481_p13 = scmp.ne.s32.totalorder %s60_s17, %s480_s1  ;;  %p486_p1 = scmp.lt.s32.totalorder %s480_s1, %s480_s1 }
  0x3e   :  { %p487_p2 = por %p486_p1, %p485_p0 }
  0x40   :  { %p488_p3 = pnand %p487_p2, %p481_p13 }
  0x42   :  { %491 = shalt.err (!%p488_p3)
}
  0x43   :  { %65 = dma.hbm_to_vmem [thread:$0]  %s656_s5, 512, %s60_s17, [#allocation9], %s523_s11, %s523_s11, %s524_s12  }
  0x44   :  { %514 = dma.done.wait [#allocation3], 128  }
  0x45   :  { %515 = vsyncadd [#allocation3], 4294967168 }
  0x46   :  { %516 = dma.done.wait [#allocation6], 640  }
  0x47   :  { %517 = vsyncadd [#allocation6], 4294966656 }
  0x48   :  { %518 = dma.done.wait [#allocation9], 512  }
  0x49   :  { %519 = vsyncadd [#allocation9], 4294966784  ;;  %v528_v0 = vmov 0.0   ;;  %vm529_vm0 = vmmov 0   ;;  %v395_v1 = vld [vmem:[#allocation5] sm:$0xff]   ;;  %v81_v2 = vld [vmem:[#allocation2] sm:$0xff] }
  0x4a   :  { %356 = vmatprep.subr.bf16.mxu0 %v528_v0  ;;  %358 = vmatprep.mubr.msk.bf16.mxu0 %vm529_vm0, %v528_v0  ;;  %v82_v3 = vpack.c.bf16 %v81_v2, %v81_v2  ;;  %vm98_vm1 = vcmask 130048   ;;  %v396_v4 = vld [vmem:[#allocation7] sm:$0xff]   ;;  %v397_v5 = vld [vmem:[#allocation7 + $0x8] sm:$0xff]   ;;  %v398_v6 = vld [vmem:[#allocation7 + $0x10] sm:$0xff]   ;;  %vm183_vm2 = vcmask 523264   ;;  %s530_s28 = smov [#allocation10]  }
  0x4b   :  { %362 = vmatprep.subr.bf16.mxu1 %v528_v0  ;;  %370 = vmatprep.mubr.msk.bf16.mxu1 %vm529_vm0, %v528_v0  ;;  %v399_v7 = vld [vmem:[#allocation7 + $0x18] sm:$0xff]   ;;  %v400_v8 = vld [vmem:[#allocation8] sm:$0xff]   ;;  %v401_v9 = vld [vmem:[#allocation8 + $0x8] sm:$0xff]   ;;  %s318_s29 = sshll.u32 %s530_s28, 4  ;;  %s319_s29 = int_to_ptr.vmem [resolvable:$true] %s318_s29 }
  0x4c   :  { %357 = vmatpush3.bf16.msra.mxu0 %v395_v1  ;;  %363 = vmatpush3.bf16.msra.mxu1 %v396_v4  ;;  %v329_v10 = vld [vmem:[%s653_s2] ss:$0 sm:$0xff]  ;;  %v403_v19 = vld [vmem:[#allocation8 + $0x18] sm:$0xff]   ;;  %p497_p5 = scmp.lt.s32.totalorder %s319_s29, %s319_s29 }
  0x4d   :  { %374 = vmatprep.subr.bf16.mxu0 %v528_v0  ;;  %364 = vmatprep.subr.bf16.mxu1 %v528_v0  ;;  %v402_v18 = vld [vmem:[#allocation8 + $0x10] sm:$0xff]  }
  0x4e   :  { %v332_v20 = vld [vmem:[%s655_s4] ss:$0 sm:$0xff]  ;;  %s492_s4 = scalar_lea.vmem %s319_s29, 128 }
  0x4f   :  { %359 = vmatmul.mubr.msk.bf16.vlgmr.msra.gmra.mrb[0].mxu0 %vm98_vm1, %v82_v3  ;;  %v338_v28 = vld [vmem:[%s657_s6] ss:$0 sm:$0xff]  ;;  %p493_p4 = scmp.ne.s32.totalorder %s319_s29, %s492_s4  ;;  %p498_p6 = scmp.lt.s32.totalorder %s492_s4, %s492_s4 }
  0x50   :  { %382 = vmatprep.mubr.msk.bf16.mxu0 %vm529_vm0, %v528_v0  ;;  %365 = vmatpush3.bf16.msra.mxu1 %v397_v5 }
  0x51   :  { %366 = vmatprep.subr.bf16.mxu1 %v528_v0  ;;  %375 = vmatpush3.bf16.msra.mxu0 %v400_v8  ;;  %p499_p7 = por %p498_p6, %p497_p5 }
  0x52   :  { %376 = vmatprep.subr.bf16.mxu0 %v528_v0 }
  0x53   :  { %p500_p8 = pnand %p499_p7, %p493_p4 }
  0x54   :  { %367 = vmatpush3.bf16.msra.mxu1 %v398_v6 }
  0x55   :  { %368 = vmatprep.subr.bf16.mxu1 %v528_v0  ;;  %377 = vmatpush3.bf16.msra.mxu0 %v401_v9 }
  0x56   :  { %378 = vmatprep.subr.bf16.mxu0 %v528_v0 }
  0x58   :  { %369 = vmatpush3.bf16.msra.mxu1 %v399_v7 }
  0x59   :  { %379 = vmatpush3.bf16.msra.mxu0 %v402_v18 }
  0x5a   :  { %380 = vmatprep.subr.bf16.mxu0 %v528_v0 }
  0x5d   :  { %381 = vmatpush3.bf16.msra.mxu0 %v403_v19 }
 0x122   :  { %v136_v11 = vpop.f32.mrb[0].mxu0 }
 0x123   :  { %v137_v12 = vadd.f32 %v329_v10, %v136_v11  ;;  %v360_v13 = vpop.f32.mrb[1].mxu0 }
 0x124   :  { %v139_v14 = vpop.f32.mrb[2].mxu0 }
 0x125   :  { %v142_v15 = vmax.f32 %v137_v12, 0.0  ;;  %v361_v16 = vpop.f32.mrb[3].mxu0 }
 0x127   :  { %v143_v17 = vpack.c.bf16 %v142_v15, %v142_v15 }
 0x129   :  { %371 = vmatmul.mubr.msk.bf16.vlgmr.msra.gmra.mrb[0].mxu1 %vm183_vm2, %v143_v17 }
 0x1fc   :  { %v221_v21 = vpop.f32.mrb[0].mxu1 }
 0x1fd   :  { %v222_v22 = vadd.f32 %v332_v20, %v221_v21  ;;  %v372_v23 = vpop.f32.mrb[1].mxu1 }
 0x1fe   :  { %v224_v24 = vpop.f32.mrb[2].mxu1 }
 0x1ff   :  { %v227_v25 = vmax.f32 %v222_v22, 0.0  ;;  %v373_v26 = vpop.f32.mrb[3].mxu1 }
 0x201   :  { %v228_v27 = vpack.c.bf16 %v227_v25, %v227_v25 }
 0x203   :  { %383 = vmatmul.mubr.msk.bf16.vlgmr.msra.gmra.mrb[4].mxu0 %vm183_vm2, %v228_v27 }
 0x2d6   :  { %v305_v29 = vpop.f32.mrb[4].mxu0 }
 0x2d7   :  { %v306_v30 = vadd.f32 %v338_v28, %v305_v29  ;;  %v384_v31 = vpop.f32.mrb[5].mxu0 }
 0x2d8   :  { %v308_v32 = vpop.f32.mrb[6].mxu0 }
 0x2d9   :  { %311 = vst [vmem:[#allocation10] sm:$0xff] %v306_v30  ;;  %v385_v33 = vpop.f32.mrb[7].mxu0 }
 0x2da   :  { %503 = shalt.err (!%p500_p8)
}
 0x2db   :  { %s504_s6 = scalar_lea.hbm %s658_s7, 128 }
 0x2dc   :  { %p505_p9 = scmp.ne.s32.totalorder %s658_s7, %s504_s6  ;;  %p508_p10 = scmp.lt.u32.totalorder %s504_s6, %s658_s7 }
 0x2de   :  { %p510_p11 = pnand %p508_p10, %p505_p9 }
 0x2e0   :  { %513 = shalt.err (!%p510_p11)
}
 0x2e1   :  { %321 = dma.vmem_to_hbm [thread:$0]  %s319_s29, 128, %s658_s7, [#allocation4]  }
 0x2e2   :  { %520 = dma.done.wait [#allocation4], 128  }
 0x2e3   :  { %521 = vsyncadd [#allocation4], 4294967168 }
 0x2e4   :  { %325 = vsyncpa [#allocation3], 1 }
 0x2e5   :  { %326 = vsyncpa [#allocation6], 1 }
 0x2e6   :  { %327 = vsyncpa [#allocation9], 1 }
 0x2e7   :  { %328 = vsyncpa [#allocation4], 1 }

</bundles_post_ra>
